<compile_context>
chip_gen: v5e
topology: v5e:2x2
jax: 0.10.0
libtpu: 0.0.40
codegen_flags: <defaults>
</compile_context>

<pallas_src>
import functools
import math

import jax
import jax.numpy as jnp
from jax.experimental import pallas as pl
from jax.experimental.pallas import tpu as pltpu


def _round_up(x, m):
    return ((x + m - 1) // m) * m


def _mlp_kernel(alpha_ref, x_ref, *rest, n_layers, compute_dtype):
    """Fused MLP: n_layers x (matmul + bias) with PReLU on all but last layer.

    rest = (w0, b0, w1, b1, ..., w_{L-1}, b_{L-1}, o_ref)
    Weights are bf16 (MXU operands); accumulation, bias and PReLU are f32.
    """
    o_ref = rest[-1]
    wb_refs = rest[:-1]

    # Hoisted: single SMEM scalar read for the PReLU slope.
    a = alpha_ref[0, 0]

    h = x_ref[...]  # f32 activation block (tm, P_in)
    for layer in range(n_layers):
        w_ref = wb_refs[2 * layer]
        b_ref = wb_refs[2 * layer + 1]
        y = jnp.dot(h.astype(compute_dtype), w_ref[...],
                    preferred_element_type=jnp.float32)
        y = y + b_ref[...]                      # (1, P) broadcast, f32
        if layer < n_layers - 1:
            y = jnp.where(y >= 0.0, y, a * y)   # PReLU in f32
            # dropout (eval mode) is identity — nothing to do.
        h = y
    o_ref[...] = h.astype(o_ref.dtype)


def feedforward_net(x, weights, biases, alpha, *, row_tile=256,
                    compute_dtype=jnp.bfloat16):
    """Fused forward pass as a single Pallas kernel.

    x: [N, in_feats] f32; weights[l]: [d_l, d_{l+1}] f32 (already transposed
    from PyTorch's [out, in]); biases[l]: [d_{l+1}] f32; alpha: [1,1] f32.
    """
    N, in_feats = x.shape
    n_layers = len(weights)
    dims = [in_feats] + [w.shape[1] for w in weights]
    pdims = [_round_up(d, 128) for d in dims]   # lane-dense feature dims
    out_feats = dims[-1]

    # Row tiling: one block for small batches, 256-row "parallel" tiles for big.
    tm = min(row_tile, _round_up(N, 8))
    n_pad = _round_up(N, tm)
    grid = (n_pad // tm,)

    # Zero-pad x / weights / biases — zeros in the padded rows/cols leave the
    # valid region of every layer output unchanged.
    x_p = jnp.zeros((n_pad, pdims[0]), jnp.float32).at[:N, :in_feats].set(x)
    flat_params = []
    for l in range(n_layers):
        w_p = jnp.zeros((pdims[l], pdims[l + 1]), jnp.float32)
        w_p = w_p.at[:dims[l], :dims[l + 1]].set(weights[l])
        b_p = jnp.zeros((1, pdims[l + 1]), jnp.float32)
        b_p = b_p.at[0, :dims[l + 1]].set(biases[l])
        flat_params += [w_p.astype(compute_dtype), b_p]

    in_specs = [
        # PReLU slope: scalar in SMEM.
        pl.BlockSpec((1, 1), lambda i: (0, 0), memory_space=pltpu.SMEM),
        # Activation: tiled over rows.
        pl.BlockSpec((tm, pdims[0]), lambda i: (i, 0)),
    ]
    for l in range(n_layers):
        # Weights/biases: constant index_map -> VMEM-resident across grid steps.
        in_specs.append(pl.BlockSpec((pdims[l], pdims[l + 1]), lambda i: (0, 0)))
        in_specs.append(pl.BlockSpec((1, pdims[l + 1]), lambda i: (0, 0)))

    kernel = functools.partial(_mlp_kernel, n_layers=n_layers,
                               compute_dtype=compute_dtype)

    out_p = pl.pallas_call(
        kernel,
        out_shape=jax.ShapeDtypeStruct((n_pad, pdims[-1]), jnp.float32),
        grid=grid,
        in_specs=in_specs,
        out_specs=pl.BlockSpec((tm, pdims[-1]), lambda i: (i, 0)),
        compiler_params=pltpu.CompilerParams(
            dimension_semantics=("parallel",)),
    )(alpha, x_p, *flat_params)

    return out_p[:N, :out_feats]


def init_feedforward_params(key, in_feats, hidden, out_feats, n_layers):
    """Deterministic init matching FeedForwardNet.reset_parameters():
    xavier_uniform_(weight, gain=calculate_gain('relu')), zeros_(bias),
    PReLU slope init 0.25 (PyTorch default)."""
    gain = math.sqrt(2.0)  # calculate_gain('relu')
    if n_layers == 1:
        dims = [(in_feats, out_feats)]
    else:
        dims = [(in_feats, hidden)]
        dims += [(hidden, hidden)] * (n_layers - 2)
        dims += [(hidden, out_feats)]

    weights, biases = [], []
    for (fan_in, fan_out) in dims:
        key, sub = jax.random.split(key)
        bound = gain * math.sqrt(6.0 / (fan_in + fan_out))
        # Stored as [in, out]; xavier bound is symmetric in fan_in/fan_out so
        # this matches torch's init of the [out, in] weight, transposed.
        w = jax.random.uniform(sub, (fan_in, fan_out), jnp.float32,
                               minval=-bound, maxval=bound)
        weights.append(w)
        biases.append(jnp.zeros((fan_out,), jnp.float32))
    alpha = jnp.full((1, 1), 0.25, jnp.float32)  # nn.PReLU() default
    return weights, biases, alpha


def feedforward_net_ref(x, weights, biases, alpha, *,
                        compute_dtype=jnp.bfloat16):
    """Pure-JAX reference mirroring the kernel's bf16-operand / f32-accumulate
    numerics (matmul in bf16, bias + PReLU in f32)."""
    n_layers = len(weights)
    h = x
    for layer in range(n_layers):
        h = jnp.dot(h.astype(compute_dtype),
                    weights[layer].astype(compute_dtype),
                    preferred_element_type=jnp.float32) + biases[layer]
        if layer < n_layers - 1:
            a = alpha[0, 0]
            h = jnp.where(h >= 0.0, h, a * h)
    return h


if __name__ == "__main__":
    # Small shapes consistent with the module's forward: x is [batch, in_feats].
    batch, in_feats, hidden, out_feats, n_layers = 8, 16, 32, 8, 3

    key = jax.random.PRNGKey(0)
    key_x, key_p = jax.random.split(key)
    x = jax.random.normal(key_x, (batch, in_feats), jnp.float32)

    weights, biases, alpha = init_feedforward_params(
        key_p, in_feats, hidden, out_feats, n_layers)

    out = feedforward_net(x, weights, biases, alpha)
    out = jax.block_until_ready(out)
    ref = feedforward_net_ref(x, weights, biases, alpha)
    assert out.shape == (batch, out_feats), out.shape
    assert jnp.allclose(out, ref, atol=1e-3, rtol=1e-3), "mismatch vs reference"

    # Second run with a larger batch to exercise the row-tiled grid path.
    big_batch = 300
    x_big = jax.random.normal(jax.random.PRNGKey(1), (big_batch, in_feats),
                              jnp.float32)
    out_big = jax.block_until_ready(
        feedforward_net(x_big, weights, biases, alpha))
    ref_big = feedforward_net_ref(x_big, weights, biases, alpha)
    assert out_big.shape == (big_batch, out_feats), out_big.shape
    assert jnp.allclose(out_big, ref_big, atol=1e-3, rtol=1e-3), \
        "mismatch vs reference (tiled grid)"

    print("KERNEL_OK")
</pallas_src>

<mosaic_0001>
module attributes {stable_mosaic.version = 11 : i64} {
  func.func @_mlp_kernel(%arg0: i32, %arg1: memref<1x1xf32, #tpu.memory_space<smem>>, %arg2: memref<8x128xf32, #tpu.memory_space<vmem>>, %arg3: memref<128x128xbf16, #tpu.memory_space<vmem>>, %arg4: memref<1x128xf32, #tpu.memory_space<vmem>>, %arg5: memref<128x128xbf16, #tpu.memory_space<vmem>>, %arg6: memref<1x128xf32, #tpu.memory_space<vmem>>, %arg7: memref<128x128xbf16, #tpu.memory_space<vmem>>, %arg8: memref<1x128xf32, #tpu.memory_space<vmem>>, %arg9: memref<8x128xf32, #tpu.memory_space<vmem>>) attributes {dimension_semantics = [#tpu.dimension_semantics<parallel>], iteration_bounds = array<i64: 1>, scalar_prefetch = 0 : i64, scratch_operands = 0 : i64, tpu.core_type = #tpu.core_type<tc>, window_params = [{transform_indices = @transform_0, window_bounds = array<i64: 1, 1>}, {transform_indices = @transform_1, window_bounds = array<i64: 8, 128>}, {pipeline_mode = #tpu.pipeline_mode<synchronous>, transform_indices = @transform_2, window_bounds = array<i64: 128, 128>}, {pipeline_mode = #tpu.pipeline_mode<synchronous>, transform_indices = @transform_3, window_bounds = array<i64: 1, 128>}, {pipeline_mode = #tpu.pipeline_mode<synchronous>, transform_indices = @transform_4, window_bounds = array<i64: 128, 128>}, {pipeline_mode = #tpu.pipeline_mode<synchronous>, transform_indices = @transform_5, window_bounds = array<i64: 1, 128>}, {pipeline_mode = #tpu.pipeline_mode<synchronous>, transform_indices = @transform_6, window_bounds = array<i64: 128, 128>}, {pipeline_mode = #tpu.pipeline_mode<synchronous>, transform_indices = @transform_7, window_bounds = array<i64: 1, 128>}, {transform_indices = @transform_8, window_bounds = array<i64: 8, 128>}]} {
    %c0 = arith.constant 0 : index
    %c0_0 = arith.constant 0 : index
    %0 = memref.load %arg1[%c0, %c0_0] : memref<1x1xf32, #tpu.memory_space<smem>>
    %c0_1 = arith.constant 0 : index
    %c0_2 = arith.constant 0 : index
    %1 = vector.load %arg2[%c0_1, %c0_2] : memref<8x128xf32, #tpu.memory_space<vmem>>, vector<8x128xf32>
    %2 = arith.truncf %1 : vector<8x128xf32> to vector<8x128xbf16>
    %c0_3 = arith.constant 0 : index
    %c0_4 = arith.constant 0 : index
    %3 = vector.load %arg3[%c0_3, %c0_4] : memref<128x128xbf16, #tpu.memory_space<vmem>>, vector<128x128xbf16>
    %cst = arith.constant dense<0.000000e+00> : vector<8x128xf32>
    %4 = tpu.matmul %2, %3, %cst {dimension_numbers = #tpu.dot_dimension_numbers<[1], [0], [0], [1], [0, 0, 1, 1], [], []>} : vector<8x128xbf16>, vector<128x128xbf16>, vector<8x128xf32> -> vector<8x128xf32>
    %c0_5 = arith.constant 0 : index
    %c0_6 = arith.constant 0 : index
    %5 = vector.load %arg4[%c0_5, %c0_6] : memref<1x128xf32, #tpu.memory_space<vmem>>, vector<1x128xf32>
    %6 = vector.broadcast %5 : vector<1x128xf32> to vector<8x128xf32>
    %7 = arith.addf %4, %6 : vector<8x128xf32>
    %cst_7 = arith.constant 0.000000e+00 : f32
    %8 = vector.broadcast %cst_7 : f32 to vector<8x128xf32>
    %9 = arith.cmpf oge, %7, %8 : vector<8x128xf32>
    %10 = vector.broadcast %0 : f32 to vector<8x128xf32>
    %11 = arith.mulf %10, %7 : vector<8x128xf32>
    %12 = arith.select %9, %7, %11 : vector<8x128xi1>, vector<8x128xf32>
    %13 = arith.truncf %12 : vector<8x128xf32> to vector<8x128xbf16>
    %c0_8 = arith.constant 0 : index
    %c0_9 = arith.constant 0 : index
    %14 = vector.load %arg5[%c0_8, %c0_9] : memref<128x128xbf16, #tpu.memory_space<vmem>>, vector<128x128xbf16>
    %cst_10 = arith.constant dense<0.000000e+00> : vector<8x128xf32>
    %15 = tpu.matmul %13, %14, %cst_10 {dimension_numbers = #tpu.dot_dimension_numbers<[1], [0], [0], [1], [0, 0, 1, 1], [], []>} : vector<8x128xbf16>, vector<128x128xbf16>, vector<8x128xf32> -> vector<8x128xf32>
    %c0_11 = arith.constant 0 : index
    %c0_12 = arith.constant 0 : index
    %16 = vector.load %arg6[%c0_11, %c0_12] : memref<1x128xf32, #tpu.memory_space<vmem>>, vector<1x128xf32>
    %17 = vector.broadcast %16 : vector<1x128xf32> to vector<8x128xf32>
    %18 = arith.addf %15, %17 : vector<8x128xf32>
    %cst_13 = arith.constant 0.000000e+00 : f32
    %19 = vector.broadcast %cst_13 : f32 to vector<8x128xf32>
    %20 = arith.cmpf oge, %18, %19 : vector<8x128xf32>
    %21 = vector.broadcast %0 : f32 to vector<8x128xf32>
    %22 = arith.mulf %21, %18 : vector<8x128xf32>
    %23 = arith.select %20, %18, %22 : vector<8x128xi1>, vector<8x128xf32>
    %24 = arith.truncf %23 : vector<8x128xf32> to vector<8x128xbf16>
    %c0_14 = arith.constant 0 : index
    %c0_15 = arith.constant 0 : index
    %25 = vector.load %arg7[%c0_14, %c0_15] : memref<128x128xbf16, #tpu.memory_space<vmem>>, vector<128x128xbf16>
    %cst_16 = arith.constant dense<0.000000e+00> : vector<8x128xf32>
    %26 = tpu.matmul %24, %25, %cst_16 {dimension_numbers = #tpu.dot_dimension_numbers<[1], [0], [0], [1], [0, 0, 1, 1], [], []>} : vector<8x128xbf16>, vector<128x128xbf16>, vector<8x128xf32> -> vector<8x128xf32>
    %c0_17 = arith.constant 0 : index
    %c0_18 = arith.constant 0 : index
    %27 = vector.load %arg8[%c0_17, %c0_18] : memref<1x128xf32, #tpu.memory_space<vmem>>, vector<1x128xf32>
    %28 = vector.broadcast %27 : vector<1x128xf32> to vector<8x128xf32>
    %29 = arith.addf %26, %28 : vector<8x128xf32>
    %c0_19 = arith.constant 0 : index
    %c0_20 = arith.constant 0 : index
    %30 = vector.load %arg9[%c0_19, %c0_20] : memref<8x128xf32, #tpu.memory_space<vmem>>, vector<8x128xf32>
    tpu.vector_store %arg9[%c0_19, %c0_20], %29 {strides = array<i32>} : memref<8x128xf32, #tpu.memory_space<vmem>>, vector<8x128xf32>,
    return
  }
  func.func @transform_0(%arg0: i32) -> (i32, i32) {
    %c0_i32 = arith.constant 0 : i32
    %c0_i32_0 = arith.constant 0 : i32
    %c0_i32_1 = arith.constant 0 : i32
    return %c0_i32, %c0_i32_0 : i32, i32
  }
  func.func @transform_1(%arg0: i32) -> (i32, i32) {
    %c0_i32 = arith.constant 0 : i32
    %c0_i32_0 = arith.constant 0 : i32
    return %arg0, %c0_i32 : i32, i32
  }
  func.func @transform_2(%arg0: i32) -> (i32, i32) {
    %c0_i32 = arith.constant 0 : i32
    %c0_i32_0 = arith.constant 0 : i32
    %c0_i32_1 = arith.constant 0 : i32
    return %c0_i32, %c0_i32_0 : i32, i32
  }
  func.func @transform_3(%arg0: i32) -> (i32, i32) {
    %c0_i32 = arith.constant 0 : i32
    %c0_i32_0 = arith.constant 0 : i32
    %c0_i32_1 = arith.constant 0 : i32
    return %c0_i32, %c0_i32_0 : i32, i32
  }
  func.func @transform_4(%arg0: i32) -> (i32, i32) {
    %c0_i32 = arith.constant 0 : i32
    %c0_i32_0 = arith.constant 0 : i32
    %c0_i32_1 = arith.constant 0 : i32
    return %c0_i32, %c0_i32_0 : i32, i32
  }
  func.func @transform_5(%arg0: i32) -> (i32, i32) {
    %c0_i32 = arith.constant 0 : i32
    %c0_i32_0 = arith.constant 0 : i32
    %c0_i32_1 = arith.constant 0 : i32
    return %c0_i32, %c0_i32_0 : i32, i32
  }
  func.func @transform_6(%arg0: i32) -> (i32, i32) {
    %c0_i32 = arith.constant 0 : i32
    %c0_i32_0 = arith.constant 0 : i32
    %c0_i32_1 = arith.constant 0 : i32
    return %c0_i32, %c0_i32_0 : i32, i32
  }
  func.func @transform_7(%arg0: i32) -> (i32, i32) {
    %c0_i32 = arith.constant 0 : i32
    %c0_i32_0 = arith.constant 0 : i32
    %c0_i32_1 = arith.constant 0 : i32
    return %c0_i32, %c0_i32_0 : i32, i32
  }
  func.func @transform_8(%arg0: i32) -> (i32, i32) {
    %c0_i32 = arith.constant 0 : i32
    %c0_i32_0 = arith.constant 0 : i32
    return %arg0, %c0_i32 : i32, i32
  }
}

</mosaic_0001>

<bundles_post_ra>
// kernel: tpu_custom_call.1
= control target key start
LH: loop header
LB: loop body
LE: loop exit
PB: predicated region body
PF: predicated region fallthrough
CT: control target
= control target key end

     0   :  { %14 = vsyncpa [#allocation4], 0  ;;  %s704_s0 = inlined_call_operand.<no memory space> [shape: f32[1,1], index: 0, kind: input, shape index: {}]   ;;  %s705_s1 = inlined_call_operand.hbm [shape: f32[8,128], index: 1, kind: input, shape index: {}]   ;;  %s706_s2 = inlined_call_operand.hbm [shape: bf16[128,128], index: 2, kind: input, shape index: {}]   ;;  %s707_s3 = inlined_call_operand.vmem [shape: f32[1,128], index: 3, kind: input, shape index: {}]   ;;  %s708_s4 = inlined_call_operand.hbm [shape: bf16[128,128], index: 4, kind: input, shape index: {}]   ;;  %s709_s5 = inlined_call_operand.vmem [shape: f32[1,128], index: 5, kind: input, shape index: {}]   ;;  %s710_s6 = inlined_call_operand.hbm [shape: bf16[128,128], index: 6, kind: input, shape index: {}]   ;;  %s711_s7 = inlined_call_operand.vmem [shape: f32[1,128], index: 7, kind: input, shape index: {}]   ;;  %s712_s8 = inlined_call_operand.hbm [shape: f32[8,128], index: 8, kind: output, shape index: {}]  }
   0x1   :  { %15 = vsyncpa [#allocation7], 0 }
   0x2   :  { %16 = vsyncpa [#allocation10], 0  ;;  %s35_s29 = sshll.u32 %s706_s2, 4  ;;  %s36_s29 = int_to_ptr.hbm [resolvable:$true] %s35_s29 }
   0x3   :  { %17 = vsyncpa [#allocation5], 0  ;;  %s625_s30 = smov [#allocation6]   ;;  %s25_s12 = sshll.u32 %s705_s1, 4  ;;  %s26_s12 = int_to_ptr.hbm [resolvable:$true] %s25_s12 }
   0x4   :  { %s37_s9 = sshll.u32 %s625_s30, 4  ;;  %s626_s13 = smov 64   ;;  %s38_s9 = int_to_ptr.vmem [resolvable:$true] %s37_s9 }
   0x5   :  { %s627_s14 = smov 4   ;;  %s628_s15 = smov [#allocation3]  }
   0x6   :  { %43 = dma.hbm_to_vmem [thread:$0]  %s36_s29, 1024, %s38_s9, [#allocation7], %s626_s13, %s626_s13, %s627_s14  }
   0x7   :  { %s27_s16 = sshll.u32 %s628_s15, 4  ;;  %s50_s19 = sshll.u32 %s708_s4, 4  ;;  %s28_s16 = int_to_ptr.vmem [resolvable:$true] %s27_s16  ;;  %s51_s19 = int_to_ptr.hbm [resolvable:$true] %s50_s19 }
   0x8   :  { %30 = dma.hbm_to_vmem [thread:$0]  %s26_s12, 128, %s28_s16, [#allocation4]  }
   0x9   :  { %s65_s21 = sshll.u32 %s710_s6, 4  ;;  %s629_s22 = smov [#allocation8]   ;;  %s66_s21 = int_to_ptr.hbm [resolvable:$true] %s65_s21 }
   0xa   :  { %s52_s23 = sshll.u32 %s629_s22, 4  ;;  %s630_s1 = smov [#allocation9]   ;;  %s53_s23 = int_to_ptr.vmem [resolvable:$true] %s52_s23 }
   0xb   :  { %58 = dma.hbm_to_vmem [thread:$0]  %s51_s19, 1024, %s53_s23, [#allocation7], %s626_s13, %s626_s13, %s627_s14  }
   0xc   :  { %s67_s24 = sshll.u32 %s630_s1, 4  ;;  %s68_s24 = int_to_ptr.vmem [resolvable:$true] %s67_s24 }
   0xd   :  { %73 = dma.hbm_to_vmem [thread:$0]  %s66_s21, 1024, %s68_s24, [#allocation10], %s626_s13, %s626_s13, %s627_s14  }
   0xe   :  { %617 = dma.done.wait [#allocation4], 128  }
   0xf   :  { %618 = vsyncadd [#allocation4], 4294967168 }
  0x10   :  { %619 = dma.done.wait [#allocation7], 2048  }
  0x11   :  { %620 = vsyncadd [#allocation7], 4294965248 }
  0x12   :  { %621 = dma.done.wait [#allocation10], 1024  }
  0x13   :  { %622 = vsyncadd [#allocation10], 4294966272  ;;  %v470_v0 = vld [vmem:[#allocation6 + $0x38] sm:$0xff]  ;;  %v469_v1 = vld [vmem:[#allocation6 + $0x30] sm:$0xff]  ;;  %v177_v26 = vstv %s704_s0  ;;  %s631_s29 = smov [#allocation11]   ;;  %s355_s11 = sshll.u32 %s712_s8, 4  ;;  %s356_s11 = int_to_ptr.hbm [resolvable:$true] %s355_s11 }
  0x14   :  { %163 = vmatpush.bf16.msra.mxu0 %v470_v0  ;;  %v478_v2 = vld [vmem:[#allocation8 + $0x38] sm:$0xff]  ;;  %v477_v3 = vld [vmem:[#allocation8 + $0x30] sm:$0xff]  ;;  %v468_v4 = vld [vmem:[#allocation6 + $0x28] sm:$0xff]  ;;  %s353_s30 = sshll.u32 %s631_s29, 4  ;;  %s354_s30 = int_to_ptr.vmem [resolvable:$true] %s353_s30 }
  0x15   :  { %249 = vmatpush.bf16.msra.mxu1 %v478_v2  ;;  %v476_v5 = vld [vmem:[#allocation8 + $0x28] sm:$0xff]  ;;  %v467_v6 = vld [vmem:[#allocation6 + $0x20] sm:$0xff]  ;;  %v466_v8 = vld [vmem:[#allocation6 + $0x18] sm:$0xff] }
  0x16   :  { %v475_v7 = vld [vmem:[#allocation8 + $0x20] sm:$0xff]  ;;  %v474_v9 = vld [vmem:[#allocation8 + $0x18] sm:$0xff]  ;;  %v465_v10 = vld [vmem:[#allocation6 + $0x10] sm:$0xff] }
  0x17   :  { %v473_v11 = vld [vmem:[#allocation8 + $0x10] sm:$0xff]  ;;  %v464_v12 = vld [vmem:[#allocation6 + $0x8] sm:$0xff]  ;;  %v463_v13 = vld [vmem:[#allocation6] sm:$0xff] }
  0x18   :  { %164 = vmatpush.bf16.msra.mxu0 %v469_v1  ;;  %v93_v14 = vld [vmem:[#allocation3] sm:$0xff]  ;;  %v472_v16 = vld [vmem:[#allocation8 + $0x8] sm:$0xff]  ;;  %v471_v17 = vld [vmem:[#allocation8] sm:$0xff] }
  0x19   :  { %250 = vmatpush.bf16.msra.mxu1 %v477_v3  ;;  %v94_v15 = vpack.c.bf16 %v93_v14, %v93_v14  ;;  %v486_v18 = vld [vmem:[#allocation9 + $0x38] sm:$0xff]  ;;  %v485_v19 = vld [vmem:[#allocation9 + $0x30] sm:$0xff]  ;;  %v484_v20 = vld [vmem:[#allocation9 + $0x28] sm:$0xff] }
  0x1a   :  { %334 = vmatpush.bf16.msra.mxu2 %v486_v18  ;;  %v483_v21 = vld [vmem:[#allocation9 + $0x20] sm:$0xff]  ;;  %v482_v22 = vld [vmem:[#allocation9 + $0x18] sm:$0xff]  ;;  %v481_v23 = vld [vmem:[#allocation9 + $0x10] sm:$0xff] }
  0x1b   :  { %v494_v24 = vld [vmem:[%s707_s3] ss:$0 sm:$0xff]  ;;  %v480_v32 = vld [vmem:[#allocation9 + $0x8] sm:$0xff]  ;;  %v479_v33 = vld [vmem:[#allocation9] sm:$0xff] }
  0x1c   :  { %165 = vmatpush.bf16.msra.mxu0 %v468_v4  ;;  %v495_v34 = vld [vmem:[%s709_s5] ss:$0 sm:$0xff] }
  0x1d   :  { %251 = vmatpush.bf16.msra.mxu1 %v476_v5  ;;  %v496_v41 = vld [vmem:[%s711_s7] ss:$0 sm:$0xff] }
  0x1e   :  { %335 = vmatpush.bf16.msra.mxu2 %v485_v19 }
  0x20   :  { %166 = vmatpush.bf16.msra.mxu0 %v467_v6 }
  0x21   :  { %252 = vmatpush.bf16.msra.mxu1 %v475_v7 }
  0x22   :  { %336 = vmatpush.bf16.msra.mxu2 %v484_v20 }
  0x24   :  { %167 = vmatpush.bf16.msra.mxu0 %v466_v8 }
  0x25   :  { %253 = vmatpush.bf16.msra.mxu1 %v474_v9 }
  0x26   :  { %337 = vmatpush.bf16.msra.mxu2 %v483_v21 }
  0x28   :  { %168 = vmatpush.bf16.msra.mxu0 %v465_v10 }
  0x29   :  { %254 = vmatpush.bf16.msra.mxu1 %v473_v11 }
  0x2a   :  { %338 = vmatpush.bf16.msra.mxu2 %v482_v22 }
  0x2c   :  { %169 = vmatpush.bf16.msra.mxu0 %v464_v12 }
  0x2d   :  { %255 = vmatpush.bf16.msra.mxu1 %v472_v16 }
  0x2e   :  { %339 = vmatpush.bf16.msra.mxu2 %v481_v23 }
  0x30   :  { %170 = vmatpush.bf16.msra.mxu0 %v463_v13 }
  0x31   :  { %256 = vmatpush.bf16.msra.mxu1 %v471_v17 }
  0x32   :  { %340 = vmatpush.bf16.msra.mxu2 %v480_v32 }
  0x33   :  { %171 = vmatmul.bf16.vlgmr.msra.gmra.mxu0 %v94_v15 }
  0x36   :  { %341 = vmatpush.bf16.msra.mxu2 %v479_v33 }
  0xb0   :  { %v172_v25 = vpop.f32.mrf.mxu0 }
  0xb1   :  { %v173_v27 = vadd.f32 %v494_v24, %v172_v25 }
  0xb3   :  { %v178_v28 = vmul.f32 %v177_v26, %v173_v27  ;;  %vm176_vm0 = vcmp.ge.f32.partialorder %v173_v27, 0.0 }
  0xb5   :  { %v179_v29 = vsel %vm176_vm0, %v173_v27, %v178_v28 }
  0xb6   :  { %v180_v30 = vpack.c.bf16 %v179_v29, %v179_v29 }
  0xb8   :  { %v174_v31 = vpop.f32.mrf.mxu0  ;;  %257 = vmatmul.bf16.vlgmr.msra.gmra.mxu1 %v180_v30 }
 0x135   :  { %v258_v35 = vpop.f32.mrf.mxu1 }
 0x136   :  { %v259_v36 = vadd.f32 %v495_v34, %v258_v35 }
 0x138   :  { %v263_v37 = vmul.f32 %v259_v36, %v177_v26  ;;  %vm262_vm1 = vcmp.ge.f32.partialorder %v259_v36, 0.0 }
 0x13a   :  { %v264_v38 = vsel %vm262_vm1, %v259_v36, %v263_v37 }
 0x13b   :  { %v265_v39 = vpack.c.bf16 %v264_v38, %v264_v38 }
 0x13d   :  { %v260_v40 = vpop.f32.mrf.mxu1  ;;  %342 = vmatmul.bf16.vlgmr.msra.gmra.mxu2 %v265_v39 }
 0x1c0   :  { %v343_v42 = vpop.f32.mrf.mxu2 }
 0x1c1   :  { %v344_v43 = vadd.f32 %v496_v41, %v343_v42 }
 0x1c3   :  { %347 = vst [vmem:[#allocation11] sm:$0xff] %v344_v43 }
 0x1c4   :  { %358 = dma.vmem_to_hbm [thread:$0]  %s354_s30, 128, %s356_s11, [#allocation5]  }
 0x1c8   :  { %v345_v44 = vpop.f32.mrf.mxu2 }
 0x1c9   :  { %623 = dma.done.wait [#allocation5], 128  }
 0x1ca   :  { %624 = vsyncadd [#allocation5], 4294967168 }
 0x1cb   :  { %363 = vsyncpa [#allocation4], 1 }
 0x1cc   :  { %364 = vsyncpa [#allocation7], 1 }
 0x1cd   :  { %365 = vsyncpa [#allocation10], 1 }
 0x1ce   :  { %366 = vsyncpa [#allocation5], 1 }

</bundles_post_ra>
